<compile_context>
chip_gen: v6e
topology: v6e:2x2x1
jax: 0.10.0
libtpu: 0.0.40
codegen_flags: <defaults>
</compile_context>

<pallas_src>
import jax
import jax.numpy as jnp
import numpy as np
from jax import lax
from jax.experimental import pallas as pl
from jax.experimental.pallas import tpu as pltpu


def _edge_masks(H, W):
    """(9, H*W) float32 0/1 masks: mask[t, p] == 1 iff tap t = (ky*3 + kx) applied
    at flattened pixel p = h*W + w stays inside the image (kills both the
    row-wrap and the column-wrap of a circular shift)."""
    p = np.arange(H * W)
    hh, ww = p // W, p % W
    rows = []
    for ky in range(3):
        dy = ky - 1
        for kx in range(3):
            dx = kx - 1
            valid = ((hh + dy >= 0) & (hh + dy < H) &
                     (ww + dx >= 0) & (ww + dx < W))
            rows.append(valid.astype(np.float32))
    return jnp.asarray(np.stack(rows, axis=0))


def _pack_block_diag_weights(w, nb):
    """OIHW (c_out, c_in, 3, 3) -> bf16 (nb*c_out, 9*nb*c_in) block-diagonal weight.

    Column ordering is (tap, image, in_channel) so it matches the tap operand
    built in-kernel by concatenating the 9 rolled (nb*c_in, HW) slabs.
    big[i*c_out + o, (t*nb + j)*c_in + c] = (i == j) * w[o, c, ky, kx], t = ky*3+kx.
    """
    c_out, c_in = w.shape[0], w.shape[1]
    w_taps = jnp.transpose(w, (2, 3, 0, 1)).reshape(9, c_out, c_in)  # tap-major
    eye = jnp.eye(nb, dtype=w.dtype)
    big = jnp.einsum('ij,toc->iotjc', eye, w_taps)
    return big.reshape(nb * c_out, 9 * nb * c_in).astype(jnp.bfloat16)


def _make_kernel(H, W, c_in, c_mid, c_out, nb):
    HW = H * W
    shifts = [(ky - 1) * W + (kx - 1) for ky in range(3) for kx in range(3)]

    def taps_operand(slab, m_ref):
        """slab: (rows, HW) f32 -> bf16 (9*rows, HW) fused-conv MXU operand.

        Tap t at pixel p is slab[:, p + s_t] if that neighbour is in-bounds and
        0 otherwise: pltpu.roll (XLU slot, dual-issues with VPU/MXU) provides the
        circular shift and the 0/1 edge mask zeroes every wrapped position.
        """
        parts = []
        for t, s in enumerate(shifts):
            if s == 0:
                parts.append(slab)                       # centre tap: mask == 1
            else:
                shifted = pltpu.roll(slab, shift=(-s) % HW, axis=1)
                parts.append(shifted * m_ref[t:t + 1, :])
        return jnp.concatenate(parts, axis=0).astype(jnp.bfloat16)

    def kernel(x_ref, m_ref, w1_ref, b1_ref, w2_ref, b2_ref, o_ref):
        x = x_ref[...].astype(jnp.float32)               # (nb*c_in, HW) packed slab

        # conv1: single fused matmul (K = 9*nb*c_in), f32 accumulate, then SiLU.
        out1 = jnp.dot(w1_ref[...], taps_operand(x, m_ref),
                       preferred_element_type=jnp.float32) + b1_ref[...]
        out1 = out1 * pl.reciprocal(1.0 + jnp.exp(-out1), approx=True)   # SiLU

        # conv2: second fused matmul.
        out2 = jnp.dot(w2_ref[...], taps_operand(out1, m_ref),
                       preferred_element_type=jnp.float32) + b2_ref[...]

        # (out2 + x) * (sigmoid(out2) - 0.5)
        att = pl.reciprocal(1.0 + jnp.exp(-out2), approx=True) - 0.5
        o_ref[...] = ((out2 + x) * att).astype(o_ref.dtype)

    return kernel


def spab1t2_forward(x, w1, b1, w2, b2):
    """x: (N, C_in, H, W) NCHW; w*: (C_out, C_in, 3, 3) OIHW; b*: (C_out,)."""
    N, c_in, H, W = x.shape
    c_mid = w1.shape[0]
    c_out = w2.shape[0]
    assert w1.shape == (c_mid, c_in, 3, 3) and w2.shape == (c_out, c_mid, 3, 3)
    assert c_out == c_in, "residual add requires out_channels == in_channels"
    HW = H * W

    # Pack nb images per grid step onto the sublane axis (nb*C = 8 fills vregs).
    nb = min(max(1, 8 // max(c_in, c_mid, c_out)), N)
    while N % nb:
        nb -= 1

    x_pack = x.reshape(N // nb, nb * c_in, HW)           # lane-dense, sublane-packed

    w1_big = _pack_block_diag_weights(w1, nb)            # (nb*c_mid, 9*nb*c_in) bf16
    w2_big = _pack_block_diag_weights(w2, nb)            # (nb*c_out, 9*nb*c_mid) bf16
    b1_big = jnp.tile(b1, nb).reshape(nb * c_mid, 1).astype(jnp.float32)
    b2_big = jnp.tile(b2, nb).reshape(nb * c_out, 1).astype(jnp.float32)
    masks = _edge_masks(H, W)

    kernel = _make_kernel(H, W, c_in, c_mid, c_out, nb)

    out_pack = pl.pallas_call(
        kernel,
        out_shape=jax.ShapeDtypeStruct((N // nb, nb * c_out, HW), x.dtype),
        grid_spec=pltpu.PrefetchScalarGridSpec(
            num_scalar_prefetch=0,
            grid=(N // nb,),                              # nb images per step
            in_specs=[
                pl.BlockSpec((None, nb * c_in, HW), lambda n: (n, 0, 0)),        # x
                pl.BlockSpec((9, HW), lambda n: (0, 0)),                          # masks
                pl.BlockSpec((nb * c_mid, 9 * nb * c_in), lambda n: (0, 0)),      # w1
                pl.BlockSpec((nb * c_mid, 1), lambda n: (0, 0)),                  # b1
                pl.BlockSpec((nb * c_out, 9 * nb * c_mid), lambda n: (0, 0)),     # w2
                pl.BlockSpec((nb * c_out, 1), lambda n: (0, 0)),                  # b2
            ],
            out_specs=pl.BlockSpec((None, nb * c_out, HW), lambda n: (n, 0, 0)),
        ),
        compiler_params=pltpu.CompilerParams(
            dimension_semantics=("parallel",)),           # grid steps independent
    )(x_pack, masks, w1_big, b1_big, w2_big, b2_big)

    return out_pack.reshape(N, c_out, H, W)


def ref_forward(x, w1, b1, w2, b2):
    """Pure-JAX reference matching the PyTorch forward (NCHW / OIHW)."""
    dn = lax.conv_dimension_numbers(x.shape, w1.shape, ('NCHW', 'OIHW', 'NCHW'))
    out1 = lax.conv_general_dilated(x, w1, (1, 1), 'SAME', dimension_numbers=dn,
                                    precision=lax.Precision.HIGHEST)
    out1 = out1 + b1[None, :, None, None]
    out1 = out1 * jax.nn.sigmoid(out1)
    out2 = lax.conv_general_dilated(out1, w2, (1, 1), 'SAME', dimension_numbers=dn,
                                    precision=lax.Precision.HIGHEST)
    out2 = out2 + b2[None, :, None, None]
    return (out2 + x) * (jax.nn.sigmoid(out2) - 0.5)


if __name__ == "__main__":
    # Small shapes consistent with the module: batch=2, channels=4, spatial=16.
    N, C, H, W = 2, 4, 16, 16

    key = jax.random.PRNGKey(0)
    kx, kw1, kb1, kw2, kb2 = jax.random.split(key, 5)
    x = jax.random.normal(kx, (N, C, H, W), dtype=jnp.float32)
    w1 = jax.random.normal(kw1, (C, C, 3, 3), dtype=jnp.float32) * 0.1
    b1 = jax.random.normal(kb1, (C,), dtype=jnp.float32) * 0.1
    w2 = jax.random.normal(kw2, (C, C, 3, 3), dtype=jnp.float32) * 0.1
    b2 = jax.random.normal(kb2, (C,), dtype=jnp.float32) * 0.1

    out = jax.block_until_ready(jax.jit(spab1t2_forward)(x, w1, b1, w2, b2))
    ref = jax.block_until_ready(ref_forward(x, w1, b1, w2, b2))

    assert out.shape == (N, C, H, W)
    max_err = float(jnp.max(jnp.abs(out - ref)))
    # Tolerance covers bf16 MXU operands + approx-reciprocal sigmoids while still
    # catching any layout / tap-indexing bug (those produce O(0.1 - 1) errors).
    assert max_err < 3e-2, max_err
    print("KERNEL_OK")
</pallas_src>

<mosaic_0001>
module attributes {stable_mosaic.version = 11 : i64} {
  func.func @kernel(%arg0: i32, %arg1: memref<1x8x256xf32, #tpu.memory_space<vmem>>, %arg2: memref<9x256xf32, #tpu.memory_space<vmem>>, %arg3: memref<8x72xbf16, #tpu.memory_space<vmem>>, %arg4: memref<8x1xf32, #tpu.memory_space<vmem>>, %arg5: memref<8x72xbf16, #tpu.memory_space<vmem>>, %arg6: memref<8x1xf32, #tpu.memory_space<vmem>>, %arg7: memref<1x8x256xf32, #tpu.memory_space<vmem>>) attributes {dimension_semantics = [#tpu.dimension_semantics<parallel>], iteration_bounds = array<i64: 1>, scalar_prefetch = 0 : i64, scratch_operands = 0 : i64, tpu.core_type = #tpu.core_type<tc>, window_params = [{transform_indices = @transform_0, window_bounds = array<i64: 1, 8, 256>}, {pipeline_mode = #tpu.pipeline_mode<synchronous>, transform_indices = @transform_1, window_bounds = array<i64: 9, 256>}, {pipeline_mode = #tpu.pipeline_mode<synchronous>, transform_indices = @transform_2, window_bounds = array<i64: 8, 72>}, {pipeline_mode = #tpu.pipeline_mode<synchronous>, transform_indices = @transform_3, window_bounds = array<i64: 8, 1>}, {pipeline_mode = #tpu.pipeline_mode<synchronous>, transform_indices = @transform_4, window_bounds = array<i64: 8, 72>}, {pipeline_mode = #tpu.pipeline_mode<synchronous>, transform_indices = @transform_5, window_bounds = array<i64: 8, 1>}, {transform_indices = @transform_6, window_bounds = array<i64: 1, 8, 256>}]} {
    %c0 = arith.constant 0 : index
    %c0_0 = arith.constant 0 : index
    %c0_1 = arith.constant 0 : index
    %0 = vector.load %arg1[%c0, %c0_0, %c0_1] : memref<1x8x256xf32, #tpu.memory_space<vmem>>, vector<1x8x256xf32>
    %1 = vector.shape_cast %0 : vector<1x8x256xf32> to vector<8x256xf32>
    %c0_2 = arith.constant 0 : index
    %c0_3 = arith.constant 0 : index
    %2 = vector.load %arg3[%c0_2, %c0_3] : memref<8x72xbf16, #tpu.memory_space<vmem>>, vector<8x72xbf16>
    %c17_i32 = arith.constant 17 : i32
    %3 = tpu.dynamic_rotate %1 by %c17_i32 dim 1 : vector<8x256xf32>, i32 -> vector<8x256xf32>
    %c0_4 = arith.constant 0 : index
    %c0_5 = arith.constant 0 : index
    %4 = vector.load %arg2[%c0_4, %c0_5] : memref<9x256xf32, #tpu.memory_space<vmem>>, vector<1x256xf32>
    %5 = vector.broadcast %4 : vector<1x256xf32> to vector<8x256xf32>
    %6 = arith.mulf %3, %5 : vector<8x256xf32>
    %c16_i32 = arith.constant 16 : i32
    %7 = tpu.dynamic_rotate %1 by %c16_i32 dim 1 : vector<8x256xf32>, i32 -> vector<8x256xf32>
    %c1 = arith.constant 1 : index
    %c0_6 = arith.constant 0 : index
    %8 = vector.load %arg2[%c1, %c0_6] : memref<9x256xf32, #tpu.memory_space<vmem>>, vector<1x256xf32>
    %9 = vector.broadcast %8 : vector<1x256xf32> to vector<8x256xf32>
    %10 = arith.mulf %7, %9 : vector<8x256xf32>
    %c15_i32 = arith.constant 15 : i32
    %11 = tpu.dynamic_rotate %1 by %c15_i32 dim 1 : vector<8x256xf32>, i32 -> vector<8x256xf32>
    %c2 = arith.constant 2 : index
    %c0_7 = arith.constant 0 : index
    %12 = vector.load %arg2[%c2, %c0_7] : memref<9x256xf32, #tpu.memory_space<vmem>>, vector<1x256xf32>
    %13 = vector.broadcast %12 : vector<1x256xf32> to vector<8x256xf32>
    %14 = arith.mulf %11, %13 : vector<8x256xf32>
    %c1_i32 = arith.constant 1 : i32
    %15 = tpu.dynamic_rotate %1 by %c1_i32 dim 1 : vector<8x256xf32>, i32 -> vector<8x256xf32>
    %c3 = arith.constant 3 : index
    %c0_8 = arith.constant 0 : index
    %16 = vector.load %arg2[%c3, %c0_8] : memref<9x256xf32, #tpu.memory_space<vmem>>, vector<1x256xf32>
    %17 = vector.broadcast %16 : vector<1x256xf32> to vector<8x256xf32>
    %18 = arith.mulf %15, %17 : vector<8x256xf32>
    %c255_i32 = arith.constant 255 : i32
    %19 = tpu.dynamic_rotate %1 by %c255_i32 dim 1 : vector<8x256xf32>, i32 -> vector<8x256xf32>
    %c5 = arith.constant 5 : index
    %c0_9 = arith.constant 0 : index
    %20 = vector.load %arg2[%c5, %c0_9] : memref<9x256xf32, #tpu.memory_space<vmem>>, vector<1x256xf32>
    %21 = vector.broadcast %20 : vector<1x256xf32> to vector<8x256xf32>
    %22 = arith.mulf %19, %21 : vector<8x256xf32>
    %c241_i32 = arith.constant 241 : i32
    %23 = tpu.dynamic_rotate %1 by %c241_i32 dim 1 : vector<8x256xf32>, i32 -> vector<8x256xf32>
    %c6 = arith.constant 6 : index
    %c0_10 = arith.constant 0 : index
    %24 = vector.load %arg2[%c6, %c0_10] : memref<9x256xf32, #tpu.memory_space<vmem>>, vector<1x256xf32>
    %25 = vector.broadcast %24 : vector<1x256xf32> to vector<8x256xf32>
    %26 = arith.mulf %23, %25 : vector<8x256xf32>
    %c240_i32 = arith.constant 240 : i32
    %27 = tpu.dynamic_rotate %1 by %c240_i32 dim 1 : vector<8x256xf32>, i32 -> vector<8x256xf32>
    %c7 = arith.constant 7 : index
    %c0_11 = arith.constant 0 : index
    %28 = vector.load %arg2[%c7, %c0_11] : memref<9x256xf32, #tpu.memory_space<vmem>>, vector<1x256xf32>
    %29 = vector.broadcast %28 : vector<1x256xf32> to vector<8x256xf32>
    %30 = arith.mulf %27, %29 : vector<8x256xf32>
    %c239_i32 = arith.constant 239 : i32
    %31 = tpu.dynamic_rotate %1 by %c239_i32 dim 1 : vector<8x256xf32>, i32 -> vector<8x256xf32>
    %c8 = arith.constant 8 : index
    %c0_12 = arith.constant 0 : index
    %32 = vector.load %arg2[%c8, %c0_12] : memref<9x256xf32, #tpu.memory_space<vmem>>, vector<1x256xf32>
    %33 = vector.broadcast %32 : vector<1x256xf32> to vector<8x256xf32>
    %34 = arith.mulf %31, %33 : vector<8x256xf32>
    %35 = tpu.concatenate %6, %10, %14, %18, %1, %22, %26, %30, %34 in 0 : vector<8x256xf32>, vector<8x256xf32>, vector<8x256xf32>, vector<8x256xf32>, vector<8x256xf32>, vector<8x256xf32>, vector<8x256xf32>, vector<8x256xf32>, vector<8x256xf32> -> vector<72x256xf32>
    %36 = arith.truncf %35 : vector<72x256xf32> to vector<72x256xbf16>
    %cst = arith.constant dense<0.000000e+00> : vector<8x256xf32>
    %37 = tpu.matmul %2, %36, %cst {dimension_numbers = #tpu.dot_dimension_numbers<[1], [0], [0], [1], [0, 0, 1, 1], [], []>} : vector<8x72xbf16>, vector<72x256xbf16>, vector<8x256xf32> -> vector<8x256xf32>
    %c0_13 = arith.constant 0 : index
    %c0_14 = arith.constant 0 : index
    %38 = vector.load %arg4[%c0_13, %c0_14] : memref<8x1xf32, #tpu.memory_space<vmem>>, vector<8x1xf32>
    %39 = vector.broadcast %38 : vector<8x1xf32> to vector<8x256xf32>
    %40 = arith.addf %37, %39 : vector<8x256xf32>
    %cst_15 = arith.constant 0.000000e+00 : f32
    %41 = vector.broadcast %cst_15 : f32 to vector<8x256xf32>
    %42 = arith.subf %41, %40 : vector<8x256xf32>
    %43 = math.exp %42 : vector<8x256xf32>
    %cst_16 = arith.constant 1.000000e+00 : f32
    %44 = vector.broadcast %cst_16 : f32 to vector<8x256xf32>
    %45 = arith.addf %44, %43 : vector<8x256xf32>
    %46 = tpu.reciprocal %45 {approx = true} : vector<8x256xf32> -> vector<8x256xf32>
    %47 = arith.mulf %40, %46 : vector<8x256xf32>
    %c0_17 = arith.constant 0 : index
    %c0_18 = arith.constant 0 : index
    %48 = vector.load %arg5[%c0_17, %c0_18] : memref<8x72xbf16, #tpu.memory_space<vmem>>, vector<8x72xbf16>
    %c17_i32_19 = arith.constant 17 : i32
    %49 = tpu.dynamic_rotate %47 by %c17_i32_19 dim 1 : vector<8x256xf32>, i32 -> vector<8x256xf32>
    %c0_20 = arith.constant 0 : index
    %c0_21 = arith.constant 0 : index
    %50 = vector.load %arg2[%c0_20, %c0_21] : memref<9x256xf32, #tpu.memory_space<vmem>>, vector<1x256xf32>
    %51 = vector.broadcast %50 : vector<1x256xf32> to vector<8x256xf32>
    %52 = arith.mulf %49, %51 : vector<8x256xf32>
    %c16_i32_22 = arith.constant 16 : i32
    %53 = tpu.dynamic_rotate %47 by %c16_i32_22 dim 1 : vector<8x256xf32>, i32 -> vector<8x256xf32>
    %c1_23 = arith.constant 1 : index
    %c0_24 = arith.constant 0 : index
    %54 = vector.load %arg2[%c1_23, %c0_24] : memref<9x256xf32, #tpu.memory_space<vmem>>, vector<1x256xf32>
    %55 = vector.broadcast %54 : vector<1x256xf32> to vector<8x256xf32>
    %56 = arith.mulf %53, %55 : vector<8x256xf32>
    %c15_i32_25 = arith.constant 15 : i32
    %57 = tpu.dynamic_rotate %47 by %c15_i32_25 dim 1 : vector<8x256xf32>, i32 -> vector<8x256xf32>
    %c2_26 = arith.constant 2 : index
    %c0_27 = arith.constant 0 : index
    %58 = vector.load %arg2[%c2_26, %c0_27] : memref<9x256xf32, #tpu.memory_space<vmem>>, vector<1x256xf32>
    %59 = vector.broadcast %58 : vector<1x256xf32> to vector<8x256xf32>
    %60 = arith.mulf %57, %59 : vector<8x256xf32>
    %c1_i32_28 = arith.constant 1 : i32
    %61 = tpu.dynamic_rotate %47 by %c1_i32_28 dim 1 : vector<8x256xf32>, i32 -> vector<8x256xf32>
    %c3_29 = arith.constant 3 : index
    %c0_30 = arith.constant 0 : index
    %62 = vector.load %arg2[%c3_29, %c0_30] : memref<9x256xf32, #tpu.memory_space<vmem>>, vector<1x256xf32>
    %63 = vector.broadcast %62 : vector<1x256xf32> to vector<8x256xf32>
    %64 = arith.mulf %61, %63 : vector<8x256xf32>
    %c255_i32_31 = arith.constant 255 : i32
    %65 = tpu.dynamic_rotate %47 by %c255_i32_31 dim 1 : vector<8x256xf32>, i32 -> vector<8x256xf32>
    %c5_32 = arith.constant 5 : index
    %c0_33 = arith.constant 0 : index
    %66 = vector.load %arg2[%c5_32, %c0_33] : memref<9x256xf32, #tpu.memory_space<vmem>>, vector<1x256xf32>
    %67 = vector.broadcast %66 : vector<1x256xf32> to vector<8x256xf32>
    %68 = arith.mulf %65, %67 : vector<8x256xf32>
    %c241_i32_34 = arith.constant 241 : i32
    %69 = tpu.dynamic_rotate %47 by %c241_i32_34 dim 1 : vector<8x256xf32>, i32 -> vector<8x256xf32>
    %c6_35 = arith.constant 6 : index
    %c0_36 = arith.constant 0 : index
    %70 = vector.load %arg2[%c6_35, %c0_36] : memref<9x256xf32, #tpu.memory_space<vmem>>, vector<1x256xf32>
    %71 = vector.broadcast %70 : vector<1x256xf32> to vector<8x256xf32>
    %72 = arith.mulf %69, %71 : vector<8x256xf32>
    %c240_i32_37 = arith.constant 240 : i32
    %73 = tpu.dynamic_rotate %47 by %c240_i32_37 dim 1 : vector<8x256xf32>, i32 -> vector<8x256xf32>
    %c7_38 = arith.constant 7 : index
    %c0_39 = arith.constant 0 : index
    %74 = vector.load %arg2[%c7_38, %c0_39] : memref<9x256xf32, #tpu.memory_space<vmem>>, vector<1x256xf32>
    %75 = vector.broadcast %74 : vector<1x256xf32> to vector<8x256xf32>
    %76 = arith.mulf %73, %75 : vector<8x256xf32>
    %c239_i32_40 = arith.constant 239 : i32
    %77 = tpu.dynamic_rotate %47 by %c239_i32_40 dim 1 : vector<8x256xf32>, i32 -> vector<8x256xf32>
    %c8_41 = arith.constant 8 : index
    %c0_42 = arith.constant 0 : index
    %78 = vector.load %arg2[%c8_41, %c0_42] : memref<9x256xf32, #tpu.memory_space<vmem>>, vector<1x256xf32>
    %79 = vector.broadcast %78 : vector<1x256xf32> to vector<8x256xf32>
    %80 = arith.mulf %77, %79 : vector<8x256xf32>
    %81 = tpu.concatenate %52, %56, %60, %64, %47, %68, %72, %76, %80 in 0 : vector<8x256xf32>, vector<8x256xf32>, vector<8x256xf32>, vector<8x256xf32>, vector<8x256xf32>, vector<8x256xf32>, vector<8x256xf32>, vector<8x256xf32>, vector<8x256xf32> -> vector<72x256xf32>
    %82 = arith.truncf %81 : vector<72x256xf32> to vector<72x256xbf16>
    %cst_43 = arith.constant dense<0.000000e+00> : vector<8x256xf32>
    %83 = tpu.matmul %48, %82, %cst_43 {dimension_numbers = #tpu.dot_dimension_numbers<[1], [0], [0], [1], [0, 0, 1, 1], [], []>} : vector<8x72xbf16>, vector<72x256xbf16>, vector<8x256xf32> -> vector<8x256xf32>
    %c0_44 = arith.constant 0 : index
    %c0_45 = arith.constant 0 : index
    %84 = vector.load %arg6[%c0_44, %c0_45] : memref<8x1xf32, #tpu.memory_space<vmem>>, vector<8x1xf32>
    %85 = vector.broadcast %84 : vector<8x1xf32> to vector<8x256xf32>
    %86 = arith.addf %83, %85 : vector<8x256xf32>
    %cst_46 = arith.constant 0.000000e+00 : f32
    %87 = vector.broadcast %cst_46 : f32 to vector<8x256xf32>
    %88 = arith.subf %87, %86 : vector<8x256xf32>
    %89 = math.exp %88 : vector<8x256xf32>
    %cst_47 = arith.constant 1.000000e+00 : f32
    %90 = vector.broadcast %cst_47 : f32 to vector<8x256xf32>
    %91 = arith.addf %90, %89 : vector<8x256xf32>
    %92 = tpu.reciprocal %91 {approx = true} : vector<8x256xf32> -> vector<8x256xf32>
    %cst_48 = arith.constant 5.000000e-01 : f32
    %93 = vector.broadcast %cst_48 : f32 to vector<8x256xf32>
    %94 = arith.subf %92, %93 : vector<8x256xf32>
    %95 = arith.addf %86, %1 : vector<8x256xf32>
    %96 = arith.mulf %95, %94 : vector<8x256xf32>
    %c0_49 = arith.constant 0 : index
    %c0_50 = arith.constant 0 : index
    %c0_51 = arith.constant 0 : index
    %97 = vector.load %arg7[%c0_49, %c0_50, %c0_51] : memref<1x8x256xf32, #tpu.memory_space<vmem>>, vector<1x8x256xf32>
    %98 = vector.shape_cast %97 : vector<1x8x256xf32> to vector<8x256xf32>
    %99 = vector.shape_cast %96 : vector<8x256xf32> to vector<1x8x256xf32>
    tpu.vector_store %arg7[%c0_49, %c0_50, %c0_51], %99 {strides = array<i32>} : memref<1x8x256xf32, #tpu.memory_space<vmem>>, vector<1x8x256xf32>,
    return
  }
  func.func @transform_0(%arg0: i32) -> (i32, i32, i32) {
    %c0_i32 = arith.constant 0 : i32
    %c0_i32_0 = arith.constant 0 : i32
    %c0_i32_1 = arith.constant 0 : i32
    return %arg0, %c0_i32, %c0_i32_0 : i32, i32, i32
  }
  func.func @transform_1(%arg0: i32) -> (i32, i32) {
    %c0_i32 = arith.constant 0 : i32
    %c0_i32_0 = arith.constant 0 : i32
    %c0_i32_1 = arith.constant 0 : i32
    return %c0_i32, %c0_i32_0 : i32, i32
  }
  func.func @transform_2(%arg0: i32) -> (i32, i32) {
    %c0_i32 = arith.constant 0 : i32
    %c0_i32_0 = arith.constant 0 : i32
    %c0_i32_1 = arith.constant 0 : i32
    return %c0_i32, %c0_i32_0 : i32, i32
  }
  func.func @transform_3(%arg0: i32) -> (i32, i32) {
    %c0_i32 = arith.constant 0 : i32
    %c0_i32_0 = arith.constant 0 : i32
    %c0_i32_1 = arith.constant 0 : i32
    return %c0_i32, %c0_i32_0 : i32, i32
  }
  func.func @transform_4(%arg0: i32) -> (i32, i32) {
    %c0_i32 = arith.constant 0 : i32
    %c0_i32_0 = arith.constant 0 : i32
    %c0_i32_1 = arith.constant 0 : i32
    return %c0_i32, %c0_i32_0 : i32, i32
  }
  func.func @transform_5(%arg0: i32) -> (i32, i32) {
    %c0_i32 = arith.constant 0 : i32
    %c0_i32_0 = arith.constant 0 : i32
    %c0_i32_1 = arith.constant 0 : i32
    return %c0_i32, %c0_i32_0 : i32, i32
  }
  func.func @transform_6(%arg0: i32) -> (i32, i32, i32) {
    %c0_i32 = arith.constant 0 : i32
    %c0_i32_0 = arith.constant 0 : i32
    %c0_i32_1 = arith.constant 0 : i32
    return %arg0, %c0_i32, %c0_i32_0 : i32, i32, i32
  }
}

</mosaic_0001>

<bundles_post_ra>
// kernel: tile.13
= control target key start
LH: loop header
LB: loop body
LE: loop exit
PB: predicated region body
PF: predicated region fallthrough
CT: control target
= control target key end

     0   :  { %s22_s0 = inlined_call_operand.vmem [shape: f32[4], index: 0, kind: input, shape index: {}]   ;;  %s23_s1 = inlined_call_operand.vmem [shape: f32[2,4], index: 1, kind: output, shape index: {}]  }
   0x1   :  { %v4_v0 = vld [vmem:[%s22_s0] ss:$0 sm:$0xff] }
   0x2   :  { %5 = vst [vmem:[%s23_s1] sm:$0x3] %v4_v0 }

// kernel: tile.0
= control target key start
LH: loop header
LB: loop body
LE: loop exit
PB: predicated region body
PF: predicated region fallthrough
CT: control target
= control target key end

     0   :  { %s35_s8 = smov 125   ;;  %vm8_vm0 = vcmask 7168   ;;  %s36_s11 = smov 126   ;;  %s62_s0 = inlined_call_operand.vmem [shape: f32[2,4], index: 0, kind: input, shape index: {}]   ;;  %s63_s1 = inlined_call_operand.vmem [shape: f32[8,1], index: 1, kind: output, shape index: {}]  }
   0x1   :  { %v5_v0 = vld [vmem:[%s62_s0] sm:$0x3]  ;;  %s34_s0 = smov 127  }
   0x2   :  { %6 = vst [vmem:[#allocation0] sm:$0x3] %v5_v0 }
   0x9   :  { %v10_v1 = vld [vmem:[#allocation0] sm:$0x3]  }
   0xa   :  { %v22_v2 = vld [vmem:[#allocation0] sm:$0x3]   ;;  %11 = vrot.lane.b32.xlu0 %v10_v1, %s34_s0 }
   0xb   :  { %23 = vrot.lane.b32.xlu1 %v22_v2, %s35_s8  ;;  %v7_v3 = vld [vmem:[#allocation0] sm:$0x3]  }
   0xc   :  { %v16_v4 = vld [vmem:[#allocation0] sm:$0x3]   ;;  %9 = vst.msk [vmem:[%s63_s1] ss:$4 sm:$0x3] %vm8_vm0, %v7_v3  }
   0xe   :  { %17 = vrot.lane.b32.xlu0 %v16_v4, %s36_s11 }
  0x7c   :  { %v12_v5 = vpop.permute.xlu0 %11  }
  0x7d   :  { %v24_v6 = vpop.permute.xlu1 %23   ;;  %28 = vst.msk [vmem:[%s63_s1 + $0x1] ss:$4 sm:$0x3] %vm8_vm0, %v12_v5  }
  0x7e   :  { %30 = vst.msk [vmem:[%s63_s1 + $0x3] ss:$4 sm:$0x3] %vm8_vm0, %v24_v6  }
  0x80   :  { %v18_v7 = vpop.permute.xlu0 %17  }
  0x81   :  { %29 = vst.msk [vmem:[%s63_s1 + $0x2] ss:$4 sm:$0x3] %vm8_vm0, %v18_v7  }

// kernel: spab1t2_forward.1
= control target key start
LH: loop header
LB: loop body
LE: loop exit
PB: predicated region body
PF: predicated region fallthrough
CT: control target
= control target key end

     0   :  { %s476_s23 = smov 113   ;;  %s477_s24 = smov 111   ;;  %v482_v2 = vmov 0   ;;  %v31_v4 = vlaneseq  ;;  %vm224_vm3 = vcmask 1043456   ;;  %vm220_vm9 = vcmask 588800   ;;  %s799_s0 = inlined_call_operand.vmem [shape: f32[1,8,256], index: 0, kind: input, shape index: {}]   ;;  %s800_s3 = inlined_call_operand.vmem [shape: f32[8,1], index: 3, kind: input, shape index: {}]   ;;  %s801_s1 = inlined_call_operand.vmem [shape: f32[9,256], index: 1, kind: input, shape index: {}]   ;;  %s802_s2 = inlined_call_operand.vmem [shape: bf16[8,72], index: 2, kind: input, shape index: {}]   ;;  %s803_s5 = inlined_call_operand.vmem [shape: f32[8,1], index: 5, kind: input, shape index: {}]   ;;  %s804_s4 = inlined_call_operand.vmem [shape: bf16[8,72], index: 4, kind: input, shape index: {}]   ;;  %s805_s6 = inlined_call_operand.vmem [shape: f32[1,8,256], index: 6, kind: output, shape index: {}]  }
   0x1   :  { %v523_v0 = vld [vmem:[%s799_s0] sm:$0xff]  ;;  %v532_v1 = vld [vmem:[%s799_s0 + $0x8] sm:$0xff]  ;;  %s478_s27 = smov 112   ;;  %s479_s28 = smov 127   ;;  %263 = vmatprep.mubr.bf16.mxu0 %v482_v2  ;;  %459 = vset.pattern.permute.xlu0 %v482_v2 }
   0x2   :  { %138 = vrot.lane.b32.xlu1 %v523_v0, %s476_s23  ;;  %182 = vrot.lane.b32.xlu0 %v523_v0, %s477_s24  ;;  %s480_s0 = smov 15   ;;  %s481_s29 = smov 1   ;;  %v214_v3 = vld [vmem:[%s800_s3] sm:$0xff]  ;;  %v39_v5 = vshrl.u32 %v31_v4, 7  ;;  %v565_v6 = vand.u32 127, %v31_v4 }
   0x3   :  { %406 = vmatprep.mubr.bf16.mxu1 %v482_v2  ;;  %s483_s30 = smov 17   ;;  %s484_s7 = smov 16   ;;  %v443_v9 = vld [vmem:[%s801_s1 + $0x10] ss:$8 sm:$0x3] }
   0x4   :  { %v567_v7 = vsub.s32 0, %v39_v5  ;;  %v569_v8 = vsub.s32 1, %v39_v5  ;;  %v441_v12 = vld [vmem:[%s801_s1 + $0x6] ss:$8 sm:$0x3]  ;;  %vm186_vm0 = vcmp.lt.s32.totalorder %v565_v6, 111 }
   0x5   :  { %v442_v14 = vld [vmem:[%s801_s1 + $0x7] ss:$8 sm:$0x3]  ;;  %vm142_vm1 = vcmp.lt.s32.totalorder %v565_v6, 113  ;;  %vm164_vm2 = vcmp.lt.s32.totalorder %v565_v6, 112  ;;  %vm120_vm4 = vcmp.lt.s32.totalorder %v565_v6, 127 }
   0x6   :  { %140 = vrot.lane.b32.xlu1 %v532_v1, %s476_s23  ;;  %184 = vrot.lane.b32.xlu0 %v532_v1, %s477_s24  ;;  %v579_v13 = vrot.slane %v443_v9, %v567_v7  ;;  %v585_v15 = vrot.slane %v443_v9, %v569_v8  ;;  %v589_v16 = vrot.slane %v441_v12, %v567_v7  ;;  %v440_v23 = vld [vmem:[%s801_s1 + $0x5] ss:$8 sm:$0x3]  ;;  %v438_v50 = vld [vmem:[%s801_s1 + $0x2] ss:$8 sm:$0x3] }
   0x7   :  { %v593_v19 = vrot.slane %v441_v12, %v569_v8  ;;  %v600_v22 = vrot.slane %v442_v14, %v567_v7  ;;  %v609_v26 = vrot.slane %v442_v14, %v569_v8  ;;  %v616_v33 = vrot.slane %v440_v23, %v567_v7  ;;  %v439_v51 = vld [vmem:[%s801_s1 + $0x3] ss:$8 sm:$0x3]  ;;  %v437_v12 = vld [vmem:[%s801_s1 + $0x1] ss:$8 sm:$0x3] }
   0x8   :  { %v624_v37 = vrot.slane %v440_v23, %v569_v8  ;;  %vm76_vm5 = vcmp.lt.s32.totalorder %v565_v6, 15  ;;  %v647_v56 = vrot.slane %v438_v50, %v567_v7  ;;  %v650_v57 = vrot.slane %v438_v50, %v569_v8 }
   0x9   :  { %vm98_vm6 = vcmp.lt.s32.totalorder %v565_v6, 1  ;;  %v654_v58 = vrot.slane %v439_v51, %v567_v7  ;;  %v657_v59 = vrot.slane %v439_v51, %v569_v8  ;;  %vm33_vm7 = vcmp.lt.s32.totalorder %v565_v6, 17 }
   0xa   :  { %162 = vrot.lane.b32.xlu1 %v532_v1, %s478_s27  ;;  %160 = vrot.lane.b32.xlu0 %v523_v0, %s478_s27  ;;  %vm54_vm8 = vcmp.lt.s32.totalorder %v565_v6, 16 }
   0xe   :  { %118 = vrot.lane.b32.xlu1 %v532_v1, %s479_s28  ;;  %116 = vrot.lane.b32.xlu0 %v523_v0, %s479_s28 }
  0x12   :  { %74 = vrot.lane.b32.xlu1 %v532_v1, %s480_s0  ;;  %72 = vrot.lane.b32.xlu0 %v523_v0, %s480_s0 }
  0x16   :  { %96 = vrot.lane.b32.xlu1 %v532_v1, %s481_s29  ;;  %94 = vrot.lane.b32.xlu0 %v523_v0, %s481_s29 }
  0x1a   :  { %29 = vrot.lane.b32.xlu1 %v532_v1, %s483_s30  ;;  %27 = vrot.lane.b32.xlu0 %v523_v0, %s483_s30 }
  0x1e   :  { %52 = vrot.lane.b32.xlu1 %v532_v1, %s484_s7  ;;  %50 = vrot.lane.b32.xlu0 %v523_v0, %s484_s7 }
  0x22   :  { %217 = vperm.xlu0 %459, %v214_v3  }
  0x74   :  { %v139_v10 = vpop.permute.xlu1 %138  ;;  %v183_v11 = vpop.permute.xlu0 %182 }
  0x78   :  { %v141_v17 = vpop.permute.xlu1 %140  ;;  %v185_v18 = vpop.permute.xlu0 %184 }
  0x79   :  { %v187_v20 = vsel %vm186_vm0, %v183_v11, %v185_v18  ;;  %v188_v21 = vsel %vm186_vm0, %v185_v18, %v183_v11  ;;  %v143_v24 = vsel %vm142_vm1, %v139_v10, %v141_v17  ;;  %v144_v28 = vsel %vm142_vm1, %v141_v17, %v139_v10  ;;  %v36_v11 = vld [vmem:[%s801_s1] ss:$8 sm:$0x3] }
  0x7a   :  { %v202_v25 = vmul.f32 %v579_v13, %v187_v20  ;;  %v203_v27 = vmul.f32 %v585_v15, %v188_v21  ;;  %v158_v34 = vmul.f32 %v589_v16, %v143_v24  ;;  %v159_v38 = vmul.f32 %v593_v19, %v144_v28 }
  0x7b   :  { %v679_v21 = vrot.slane %v36_v11, %v567_v7  ;;  %v682_v23 = vrot.slane %v36_v11, %v569_v8  ;;  %v686_v24 = vrot.slane %v437_v12, %v567_v7 }
  0x7c   :  { %v163_v29 = vpop.permute.xlu1 %162  ;;  %v161_v30 = vpop.permute.xlu0 %160  ;;  %v213_v31 = vpack.c.bf16 %v203_v27, %v203_v27  ;;  %v212_v32 = vpack.c.bf16 %v202_v25, %v202_v25  ;;  %v689_v25 = vrot.slane %v437_v12, %v569_v8 }
  0x7d   :  { %v165_v35 = vsel %vm164_vm2, %v161_v30, %v163_v29  ;;  %v166_v36 = vsel %vm164_vm2, %v163_v29, %v161_v30 }
  0x7e   :  { %v180_v39 = vmul.f32 %v600_v22, %v165_v35  ;;  %v181_v40 = vmul.f32 %v609_v26, %v166_v36  ;;  %444 = vmatprep.subr.msk.bf16.mxu0 %vm224_vm3, %v213_v31  ;;  %v226_v41 = vsel %vm224_vm3, %v212_v32, 0 }
  0x7f   :  { %238 = vmatpush1.bf16.msra.mxu0 %v226_v41 }
  0x80   :  { %v119_v42 = vpop.permute.xlu1 %118  ;;  %v117_v43 = vpop.permute.xlu0 %116  ;;  %v211_v44 = vpack.c.bf16 %v181_v40, %v159_v38  ;;  %v210_v45 = vpack.c.bf16 %v180_v39, %v158_v34  ;;  %v26_v39 = vld [vmem:[%s802_s2] sm:$0xf] }
  0x81   :  { %v121_v46 = vsel %vm120_vm4, %v117_v43, %v119_v42  ;;  %v122_v47 = vsel %vm120_vm4, %v119_v42, %v117_v43 }
  0x82   :  { %v136_v48 = vmul.f32 %v616_v33, %v121_v46  ;;  %v137_v49 = vmul.f32 %v624_v37, %v122_v47  ;;  %239 = vmatprep.subr.bf16.mxu0 %v211_v44 }
  0x83   :  { %240 = vmatpush1.bf16.msra.mxu0 %v210_v45 }
  0x84   :  { %v75_v52 = vpop.permute.xlu1 %74  ;;  %v73_v53 = vpop.permute.xlu0 %72  ;;  %v209_v54 = vpack.c.bf16 %v137_v49, %v532_v1  ;;  %v208_v55 = vpack.c.bf16 %v136_v48, %v523_v0 }
  0x85   :  { %v77_v60 = vsel %vm76_vm5, %v73_v53, %v75_v52  ;;  %v78_v61 = vsel %vm76_vm5, %v75_v52, %v73_v53 }
  0x86   :  { %241 = vmatprep.subr.bf16.mxu0 %v209_v54  ;;  %v92_v4 = vmul.f32 %v647_v56, %v78_v61  ;;  %v93_v5 = vmul.f32 %v650_v57, %v77_v60 }
  0x87   :  { %242 = vmatpush1.bf16.msra.mxu0 %v208_v55 }
  0x88   :  { %v97_v62 = vpop.permute.xlu1 %96  ;;  %v95_v63 = vpop.permute.xlu0 %94 }
  0x89   :  { %v99_v2 = vsel %vm98_vm6, %v95_v63, %v97_v62  ;;  %v100_v3 = vsel %vm98_vm6, %v97_v62, %v95_v63  ;;  %v359_v63 = vld [vmem:[%s803_s5] sm:$0xff] }
  0x8a   :  { %v114_v9 = vmul.f32 %v654_v58, %v100_v3  ;;  %v115_v10 = vmul.f32 %v657_v59, %v99_v2 }
  0x8c   :  { %v30_v14 = vpop.permute.xlu1 %29  ;;  %v28_v17 = vpop.permute.xlu0 %27  ;;  %v207_v18 = vpack.c.bf16 %v115_v10, %v93_v5  ;;  %v206_v20 = vpack.c.bf16 %v114_v9, %v92_v4 }
  0x8d   :  { %v34_v27 = vsel %vm33_vm7, %v28_v17, %v30_v14  ;;  %v35_v28 = vsel %vm33_vm7, %v30_v14, %v28_v17 }
  0x8e   :  { %243 = vmatprep.subr.bf16.mxu0 %v207_v18  ;;  %v48_v7 = vmul.f32 %v679_v21, %v35_v28  ;;  %v49_v8 = vmul.f32 %v682_v23, %v34_v27 }
  0x8f   :  { %244 = vmatpush1.bf16.msra.mxu0 %v206_v20 }
  0x90   :  { %v53_v29 = vpop.permute.xlu1 %52  ;;  %v51_v30 = vpop.permute.xlu0 %50 }
  0x91   :  { %v55_v31 = vsel %vm54_vm8, %v51_v30, %v53_v29  ;;  %v56_v32 = vsel %vm54_vm8, %v53_v29, %v51_v30 }
  0x92   :  { %v70_v34 = vmul.f32 %v686_v24, %v56_v32  ;;  %v71_v35 = vmul.f32 %v689_v25, %v55_v31 }
  0x94   :  { %v205_v36 = vpack.c.bf16 %v71_v35, %v49_v8  ;;  %v204_v38 = vpack.c.bf16 %v70_v34, %v48_v7 }
  0x96   :  { %245 = vmatprep.subr.bf16.mxu0 %v205_v36 }
  0x97   :  { %246 = vmatpush1.bf16.msra.mxu0 %v204_v38 }
  0x9a   :  { %445 = vmatmul.mubr.msk.bf16.vlgmr.msra.gmra.mxu0 %vm220_vm9, %v26_v39 }
  0x9d   :  { %v218_v40 = vpop.permute.xlu0 %217 }
 0x15a   :  { %v265_v41 = vpop.f32.mrf.mxu0 }
 0x15b   :  { %v266_v42 = vadd.f32 %v265_v41, %v218_v40 }
 0x15c   :  { %v267_v43 = vpop.f32.mrf.mxu0 }
 0x15d   :  { %v272_v44 = vsub.f32 0.0, %v266_v42  ;;  %v268_v45 = vadd.f32 %v267_v43, %v218_v40 }
 0x15e   :  { %v269_v46 = vpop.f32.mrf.mxu0 }
 0x15f   :  { %v274_v47 = vmul.f32 1.442695, %v272_v44  ;;  %v273_v48 = vsub.f32 0.0, %v268_v45 }
 0x160   :  { %v270_v49 = vpop.f32.mrf.mxu0 }
 0x161   :  { %460 = vpow2.f32 %v274_v47  ;;  %v276_v50 = vmul.f32 1.442695, %v273_v48 }
 0x163   :  { %462 = vpow2.f32 %v276_v50 }
 0x16e   :  { %v461_v51 = vpop.eup %460 }
 0x16f   :  { %v278_v52 = vadd.f32 1.0, %v461_v51 }
 0x170   :  { %v463_v53 = vpop.eup %462 }
 0x171   :  { %464 = vrcp.f32 %v278_v52  ;;  %v279_v54 = vadd.f32 1.0, %v463_v53 }
 0x173   :  { %466 = vrcp.f32 %v279_v54 }
 0x17e   :  { %v465_v55 = vpop.eup %464 }
 0x17f   :  { %v707_v60 = vmul.f32 %v465_v55, %v266_v42 }
 0x180   :  { %v467_v61 = vpop.eup %466 }
 0x181   :  { %325 = vrot.lane.b32.xlu0 %v707_v60, %s476_s23  ;;  %341 = vrot.lane.b32.xlu1 %v707_v60, %s477_s24  ;;  %v283_v62 = vmul.f32 %v467_v61, %v268_v45 }
 0x185   :  { %333 = vrot.lane.b32.xlu0 %v707_v60, %s478_s27  ;;  %343 = vrot.lane.b32.xlu1 %v283_v62, %s477_s24 }
 0x189   :  { %317 = vrot.lane.b32.xlu0 %v707_v60, %s479_s28  ;;  %327 = vrot.lane.b32.xlu1 %v283_v62, %s476_s23 }
 0x18d   :  { %301 = vrot.lane.b32.xlu0 %v707_v60, %s480_s0  ;;  %335 = vrot.lane.b32.xlu1 %v283_v62, %s478_s27 }
 0x191   :  { %309 = vrot.lane.b32.xlu0 %v707_v60, %s481_s29  ;;  %319 = vrot.lane.b32.xlu1 %v283_v62, %s479_s28 }
 0x195   :  { %285 = vrot.lane.b32.xlu0 %v707_v60, %s483_s30  ;;  %303 = vrot.lane.b32.xlu1 %v283_v62, %s480_s0 }
 0x199   :  { %293 = vrot.lane.b32.xlu0 %v707_v60, %s484_s7  ;;  %311 = vrot.lane.b32.xlu1 %v283_v62, %s481_s29 }
 0x19d   :  { %362 = vperm.xlu0 %459, %v359_v63   ;;  %287 = vrot.lane.b32.xlu1 %v283_v62, %s483_s30 }
 0x1a1   :  { %295 = vrot.lane.b32.xlu1 %v283_v62, %s484_s7 }
 0x1f3   :  { %v326_v2 = vpop.permute.xlu0 %325  ;;  %v342_v3 = vpop.permute.xlu1 %341 }
 0x1f7   :  { %v334_v4 = vpop.permute.xlu0 %333  ;;  %v344_v5 = vpop.permute.xlu1 %343 }
 0x1f8   :  { %v345_v9 = vsel %vm186_vm0, %v342_v3, %v344_v5  ;;  %v346_v10 = vsel %vm186_vm0, %v344_v5, %v342_v3 }
 0x1f9   :  { %v347_v11 = vmul.f32 %v345_v9, %v579_v13  ;;  %v348_v12 = vmul.f32 %v346_v10, %v585_v15 }
 0x1fb   :  { %v318_v14 = vpop.permute.xlu0 %317  ;;  %v328_v17 = vpop.permute.xlu1 %327  ;;  %v358_v18 = vpack.c.bf16 %v348_v12, %v348_v12  ;;  %v357_v20 = vpack.c.bf16 %v347_v11, %v347_v11 }
 0x1fc   :  { %v329_v28 = vsel %vm142_vm1, %v326_v2, %v328_v17  ;;  %v330_v29 = vsel %vm142_vm1, %v328_v17, %v326_v2 }
 0x1fd   :  { %446 = vmatprep.subr.msk.bf16.mxu1 %vm224_vm3, %v358_v18  ;;  %v369_v27 = vsel %vm224_vm3, %v357_v20, 0  ;;  %v331_v31 = vmul.f32 %v329_v28, %v589_v16  ;;  %v332_v32 = vmul.f32 %v330_v29, %v593_v19 }
 0x1fe   :  { %381 = vmatpush1.bf16.msra.mxu1 %v369_v27 }
 0x1ff   :  { %v336_v30 = vpop.permute.xlu1 %335  ;;  %v302_v7 = vpop.permute.xlu0 %301 }
 0x200   :  { %v337_v13 = vsel %vm164_vm2, %v334_v4, %v336_v30  ;;  %v338_v15 = vsel %vm164_vm2, %v336_v30, %v334_v4  ;;  %v284_v4 = vld [vmem:[%s804_s4] sm:$0xf] }
 0x201   :  { %v339_v8 = vmul.f32 %v337_v13, %v600_v22  ;;  %v340_v34 = vmul.f32 %v338_v15, %v609_v26 }
 0x203   :  { %v320_v35 = vpop.permute.xlu1 %319  ;;  %v356_v36 = vpack.c.bf16 %v340_v34, %v332_v32  ;;  %v355_v38 = vpack.c.bf16 %v339_v8, %v331_v31  ;;  %v310_v19 = vpop.permute.xlu0 %309 }
 0x204   :  { %v321_v39 = vsel %vm120_vm4, %v318_v14, %v320_v35  ;;  %v322_v40 = vsel %vm120_vm4, %v320_v35, %v318_v14 }
 0x205   :  { %v323_v41 = vmul.f32 %v321_v39, %v616_v33  ;;  %v324_v16 = vmul.f32 %v322_v40, %v624_v37  ;;  %382 = vmatprep.subr.bf16.mxu1 %v356_v36 }
 0x206   :  { %383 = vmatpush1.bf16.msra.mxu1 %v355_v38 }
 0x207   :  { %v304_v42 = vpop.permute.xlu1 %303  ;;  %v354_v22 = vpack.c.bf16 %v324_v16, %v283_v62  ;;  %v353_v26 = vpack.c.bf16 %v323_v41, %v707_v60  ;;  %v286_v46 = vpop.permute.xlu0 %285 }
 0x208   :  { %v305_v43 = vsel %vm76_vm5, %v302_v7, %v304_v42  ;;  %v306_v44 = vsel %vm76_vm5, %v304_v42, %v302_v7 }
 0x209   :  { %384 = vmatprep.subr.bf16.mxu1 %v354_v22  ;;  %v307_v47 = vmul.f32 %v306_v44, %v647_v56  ;;  %v308_v48 = vmul.f32 %v305_v43, %v650_v57 }
 0x20a   :  { %385 = vmatpush1.bf16.msra.mxu1 %v353_v26 }
 0x20b   :  { %v312_v45 = vpop.permute.xlu1 %311  ;;  %v294_v60 = vpop.permute.xlu0 %293 }
 0x20c   :  { %v313_v33 = vsel %vm98_vm6, %v310_v19, %v312_v45  ;;  %v314_v37 = vsel %vm98_vm6, %v312_v45, %v310_v19 }
 0x20d   :  { %v315_v49 = vmul.f32 %v314_v37, %v654_v58  ;;  %v316_v50 = vmul.f32 %v313_v33, %v657_v59 }
 0x20f   :  { %v288_v51 = vpop.permute.xlu1 %287  ;;  %v352_v52 = vpack.c.bf16 %v316_v50, %v308_v48  ;;  %v351_v53 = vpack.c.bf16 %v315_v49, %v307_v47 }
 0x210   :  { %v289_v54 = vsel %vm33_vm7, %v286_v46, %v288_v51  ;;  %v290_v55 = vsel %vm33_vm7, %v288_v51, %v286_v46 }
 0x211   :  { %386 = vmatprep.subr.bf16.mxu1 %v352_v52  ;;  %v291_v58 = vmul.f32 %v290_v55, %v679_v21  ;;  %v292_v59 = vmul.f32 %v289_v54, %v682_v23 }
 0x212   :  { %387 = vmatpush1.bf16.msra.mxu1 %v351_v53 }
 0x213   :  { %v296_v61 = vpop.permute.xlu1 %295 }
 0x214   :  { %v297_v56 = vsel %vm54_vm8, %v294_v60, %v296_v61  ;;  %v298_v57 = vsel %vm54_vm8, %v296_v61, %v294_v60 }
 0x215   :  { %v299_v62 = vmul.f32 %v298_v57, %v686_v24  ;;  %v300_v63 = vmul.f32 %v297_v56, %v689_v25 }
 0x217   :  { %v350_v2 = vpack.c.bf16 %v300_v63, %v292_v59  ;;  %v349_v3 = vpack.c.bf16 %v299_v62, %v291_v58 }
 0x218   :  { %v363_v6 = vpop.permute.xlu0 %362 }
 0x219   :  { %388 = vmatprep.subr.bf16.mxu1 %v350_v2 }
 0x21a   :  { %389 = vmatpush1.bf16.msra.mxu1 %v349_v3 }
 0x21d   :  { %447 = vmatmul.mubr.msk.bf16.vlgmr.msra.gmra.mxu1 %vm220_vm9, %v284_v4 }
 0x2dd   :  { %v408_v5 = vpop.f32.mrf.mxu1 }
 0x2de   :  { %v409_v9 = vadd.f32 %v408_v5, %v363_v6 }
 0x2df   :  { %v410_v21 = vpop.f32.mrf.mxu1 }
 0x2e0   :  { %v415_v10 = vsub.f32 0.0, %v409_v9  ;;  %v411_v23 = vadd.f32 %v410_v21, %v363_v6  ;;  %v427_v30 = vadd.f32 %v409_v9, %v523_v0 }
 0x2e1   :  { %v412_v11 = vpop.f32.mrf.mxu1 }
 0x2e2   :  { %v417_v24 = vmul.f32 1.442695, %v415_v10  ;;  %v416_v12 = vsub.f32 0.0, %v411_v23  ;;  %v428_v32 = vadd.f32 %v411_v23, %v532_v1 }
 0x2e3   :  { %v413_v25 = vpop.f32.mrf.mxu1 }
 0x2e4   :  { %468 = vpow2.f32 %v417_v24  ;;  %v419_v14 = vmul.f32 1.442695, %v416_v12 }
 0x2e6   :  { %470 = vpow2.f32 %v419_v14 }
 0x2f1   :  { %v469_v17 = vpop.eup %468 }
 0x2f2   :  { %v421_v18 = vadd.f32 1.0, %v469_v17 }
 0x2f3   :  { %v471_v20 = vpop.eup %470 }
 0x2f4   :  { %472 = vrcp.f32 %v421_v18  ;;  %v422_v27 = vadd.f32 1.0, %v471_v20 }
 0x2f6   :  { %474 = vrcp.f32 %v422_v27 }
 0x301   :  { %v473_v28 = vpop.eup %472 }
 0x302   :  { %v448_v29 = vadd.f32 -0.5, %v473_v28 }
 0x303   :  { %v475_v13 = vpop.eup %474 }
 0x304   :  { %v429_v15 = vmul.f32 %v448_v29, %v427_v30  ;;  %v449_v31 = vadd.f32 -0.5, %v475_v13 }
 0x306   :  { %431 = vst [vmem:[%s805_s6] sm:$0xff] %v429_v15  ;;  %v430_v7 = vmul.f32 %v449_v31, %v428_v32 }
 0x308   :  { %432 = vst [vmem:[%s805_s6 + $0x8] sm:$0xff] %v430_v7 }

</bundles_post_ra>
